<compile_context>
chip_gen: v7x
topology: tpu7x:2x2x1
jax: 0.10.0
libtpu: 0.0.40
codegen_flags: <defaults>
</compile_context>

<pallas_src>
import jax
import jax.numpy as jnp
from jax.experimental import pallas as pl
from jax.experimental.pallas import tpu as pltpu


def _binary_conv_kernel(xa_ref, xb_ref, w_ref, s_ref, o_ref, slab_ref):
    # xa_ref:   (1, TH, W+2p, Cin)      main rows of the padded input stripe (bf16/f32)
    # xb_ref:   (1, 2p, W+2p, Cin)      bottom halo rows
    # w_ref:    (K, K, Cin, Cout_pad)   exact ±1 sign weights (resident across grid)
    # s_ref:    (1, Cout_pad)           f32 per-channel scaling_factor
    # o_ref:    (1, TH, W, Cout_pad)    output stripe (lane-dense, 128-wide channels)
    # slab_ref: (TH+2p, W+2p, Cin)      VMEM scratch: haloed stripe
    _, TH, Wo, Co = o_ref.shape
    K = w_ref.shape[0]
    Cin = w_ref.shape[2]
    halo = xb_ref.shape[1]

    # Assemble the haloed slab in VMEM (two cheap ref-to-ref stores).
    slab_ref[:TH] = xa_ref[0]
    slab_ref[TH:TH + halo] = xb_ref[0]

    # Direct conv as K*K shifted matmuls on the MXU, f32 accumulation.
    acc = jnp.zeros((TH * Wo, Co), jnp.float32)
    for kh in range(K):                      # static loops, K=3 -> 9 taps
        for kw in range(K):
            patch = slab_ref[kh:kh + TH, kw:kw + Wo, :]          # (TH, Wo, Cin)
            acc = acc + jnp.dot(patch.reshape(TH * Wo, Cin), w_ref[kh, kw],
                                preferred_element_type=jnp.float32)

    # Per-output-channel scaling_factor applied to the f32 accumulator.
    out = acc * s_ref[...]                                       # (TH*Wo, Co) * (1, Co)
    o_ref[0] = out.reshape(TH, Wo, Co).astype(o_ref.dtype)


def hardbinary_conv_forward(x_nchw, weight_oihw, *, gamma=1.0, eps=1e-5,
                            stride=1, padding=1,
                            compute_dtype=jnp.bfloat16):
    """Matches hardbinary_conv.forward (kernel_size=3, stride=1, padding=1, groups=1)."""
    O, I, K, K2 = weight_oihw.shape
    N, C, H, W = x_nchw.shape
    assert K == K2 and C == I
    assert stride == 1 and 2 * padding == K - 1, "only module defaults implemented"

    # --- weight standardization + binarization (tiny param prep; plain JAX glue) ---
    scale = gamma * float(I * K * K) ** (-0.5)
    mean = jnp.mean(weight_oihw, axis=(1, 2, 3), keepdims=True)
    var = jnp.mean((weight_oihw - mean) ** 2, axis=(1, 2, 3), keepdims=True)  # unbiased=False
    fw = scale * (weight_oihw - mean) / (jnp.sqrt(var) + eps ** 2)
    sf = jnp.mean(jnp.abs(fw), axis=(1, 2, 3))            # (O,)  scaling_factor
    wsign = jnp.sign(fw)                                   # (O,I,K,K) values in {-1,0,+1}

    # --- lane-dense output channels: pad Cout to a multiple of 128 ---
    O_pad = ((O + 127) // 128) * 128
    wsign = jnp.pad(wsign, ((0, O_pad - O), (0, 0), (0, 0), (0, 0)))
    sf_p = jnp.pad(sf, (0, O_pad - O)).astype(jnp.float32).reshape(1, O_pad)
    # (K, K, Cin, Cout_pad); ±1/0 are exact in bf16, scaling is applied post-matmul in f32.
    w_hwio = jnp.transpose(wsign, (2, 3, 1, 0)).astype(compute_dtype)

    # --- row tiling: TH output rows per grid step, halo of 2*padding rows ---
    TH = 8
    assert TH % (2 * padding) == 0
    H_t = ((H + TH - 1) // TH) * TH
    n_row = H_t // TH
    Wp = W + 2 * padding

    x_nhwc = jnp.transpose(x_nchw, (0, 2, 3, 1)).astype(compute_dtype)
    # spatial pad (+ extra zero rows at the bottom so H_t divides evenly)
    xpad = jnp.pad(x_nhwc, ((0, 0),
                            (padding, padding + (H_t - H)),
                            (padding, padding),
                            (0, 0)))                       # (N, H_t+2p, W+2p, Cin)

    halo_blk = TH // (2 * padding)                         # halo block index multiplier

    out = pl.pallas_call(
        _binary_conv_kernel,
        out_shape=jax.ShapeDtypeStruct((N, H_t, W, O_pad), x_nchw.dtype),
        grid_spec=pltpu.PrefetchScalarGridSpec(
            num_scalar_prefetch=0,
            grid=(N, n_row),
            in_specs=[
                # main TH-row stripe of the padded input
                pl.BlockSpec((1, TH, Wp, I), lambda n, i: (n, i, 0, 0)),
                # bottom halo rows (same array, shifted 2-row window)
                pl.BlockSpec((1, 2 * padding, Wp, I),
                             lambda n, i: (n, (i + 1) * halo_blk, 0, 0)),
                # weights + per-channel scale: constant index map -> stay VMEM-resident
                pl.BlockSpec((K, K, I, O_pad), lambda n, i: (0, 0, 0, 0)),
                pl.BlockSpec((1, O_pad), lambda n, i: (0, 0)),
            ],
            out_specs=pl.BlockSpec((1, TH, W, O_pad), lambda n, i: (n, i, 0, 0)),
            scratch_shapes=[pltpu.VMEM((TH + 2 * padding, Wp, I), compute_dtype)],
        ),
        compiler_params=pltpu.CompilerParams(
            dimension_semantics=("parallel", "parallel"),   # batch & row tiles independent
            vmem_limit_bytes=32 * 1024 * 1024),             # << 64 MiB physical on v7x
    )(xpad, xpad, w_hwio, sf_p)

    out = out[:, :H, :, :O]                                 # drop row / channel padding
    return jnp.transpose(out, (0, 3, 1, 2))                 # back to NCHW


def _reference_forward(x_nchw, weight_oihw, *, gamma=1.0, eps=1e-5, padding=1):
    """Pure-JAX f32 reference (lax.conv) for correctness check."""
    O, I, K, _ = weight_oihw.shape
    scale = gamma * float(I * K * K) ** (-0.5)
    mean = jnp.mean(weight_oihw, axis=(1, 2, 3), keepdims=True)
    std = jnp.sqrt(jnp.mean((weight_oihw - mean) ** 2, axis=(1, 2, 3), keepdims=True))
    fw = scale * (weight_oihw - mean) / (std + eps ** 2)
    sf = jnp.mean(jnp.abs(fw), axis=(1, 2, 3), keepdims=True)
    bw = sf * jnp.sign(fw)
    return jax.lax.conv_general_dilated(
        x_nchw, bw, window_strides=(1, 1),
        padding=[(padding, padding), (padding, padding)],
        dimension_numbers=("NCHW", "OIHW", "NCHW"))


if __name__ == "__main__":
    batch, in_ch, out_ch, hw, ksize = 2, 4, 8, 16, 3

    key = jax.random.PRNGKey(0)
    kx, kw = jax.random.split(key)
    x = jax.random.normal(kx, (batch, in_ch, hw, hw), dtype=jnp.float32)
    # matches torch: weight = rand(shape) * 0.001  (uniform [0, 1))
    weight = jax.random.uniform(kw, (out_ch, in_ch, ksize, ksize),
                                dtype=jnp.float32) * 0.001

    ref = _reference_forward(x, weight)

    # f32 compute path: bit-faithful to the reference algorithm.
    out_f32 = jax.block_until_ready(
        hardbinary_conv_forward(x, weight, compute_dtype=jnp.float32))
    assert out_f32.shape == (batch, out_ch, hw, hw), out_f32.shape
    assert jnp.allclose(out_f32, ref, atol=1e-5, rtol=1e-5), "f32 path mismatch"

    # default bf16 MXU path: ±1 weights exact, only activation rounding differs.
    out_bf16 = jax.block_until_ready(hardbinary_conv_forward(x, weight))
    assert out_bf16.shape == (batch, out_ch, hw, hw), out_bf16.shape
    assert jnp.allclose(out_bf16, ref, atol=3e-2, rtol=3e-2), "bf16 path mismatch"

    print("KERNEL_OK")
</pallas_src>

<mosaic_0001>
module attributes {stable_mosaic.version = 11 : i64} {
  func.func @_binary_conv_kernel(%arg0: i32, %arg1: i32, %arg2: memref<1x8x18x4xf32, #tpu.memory_space<vmem>>, %arg3: memref<1x2x18x4xf32, #tpu.memory_space<vmem>>, %arg4: memref<3x3x4x128xf32, #tpu.memory_space<vmem>>, %arg5: memref<1x128xf32, #tpu.memory_space<vmem>>, %arg6: memref<1x8x16x128xf32, #tpu.memory_space<vmem>>, %arg7: memref<10x18x4xf32, #tpu.memory_space<vmem>>) attributes {dimension_semantics = [#tpu.dimension_semantics<parallel>, #tpu.dimension_semantics<parallel>], iteration_bounds = array<i64: 2, 2>, scalar_prefetch = 0 : i64, scratch_operands = 1 : i64, tpu.core_type = #tpu.core_type<tc>, window_params = [{transform_indices = @transform_0, window_bounds = array<i64: 1, 8, 18, 4>}, {transform_indices = @transform_1, window_bounds = array<i64: 1, 2, 18, 4>}, {pipeline_mode = #tpu.pipeline_mode<synchronous>, transform_indices = @transform_2, window_bounds = array<i64: 3, 3, 4, 128>}, {pipeline_mode = #tpu.pipeline_mode<synchronous>, transform_indices = @transform_3, window_bounds = array<i64: 1, 128>}, {transform_indices = @transform_4, window_bounds = array<i64: 1, 8, 16, 128>}]} {
    %c0 = arith.constant 0 : index
    %c0_0 = arith.constant 0 : index
    %c0_1 = arith.constant 0 : index
    %c0_2 = arith.constant 0 : index
    %0 = vector.load %arg2[%c0, %c0_0, %c0_1, %c0_2] : memref<1x8x18x4xf32, #tpu.memory_space<vmem>>, vector<1x8x18x4xf32>
    %1 = vector.shape_cast %0 : vector<1x8x18x4xf32> to vector<8x18x4xf32>
    %c0_3 = arith.constant 0 : index
    %c0_4 = arith.constant 0 : index
    %c0_5 = arith.constant 0 : index
    %2 = vector.load %arg7[%c0_3, %c0_4, %c0_5] : memref<10x18x4xf32, #tpu.memory_space<vmem>>, vector<8x18x4xf32>
    tpu.vector_store %arg7[%c0_3, %c0_4, %c0_5], %1 {strides = array<i32>} : memref<10x18x4xf32, #tpu.memory_space<vmem>>, vector<8x18x4xf32>,
    %c0_6 = arith.constant 0 : index
    %c0_7 = arith.constant 0 : index
    %c0_8 = arith.constant 0 : index
    %c0_9 = arith.constant 0 : index
    %3 = vector.load %arg3[%c0_6, %c0_7, %c0_8, %c0_9] : memref<1x2x18x4xf32, #tpu.memory_space<vmem>>, vector<1x2x18x4xf32>
    %4 = vector.shape_cast %3 : vector<1x2x18x4xf32> to vector<2x18x4xf32>
    %c8 = arith.constant 8 : index
    %c0_10 = arith.constant 0 : index
    %c0_11 = arith.constant 0 : index
    %5 = vector.load %arg7[%c8, %c0_10, %c0_11] : memref<10x18x4xf32, #tpu.memory_space<vmem>>, vector<2x18x4xf32>
    tpu.vector_store %arg7[%c8, %c0_10, %c0_11], %4 {strides = array<i32>} : memref<10x18x4xf32, #tpu.memory_space<vmem>>, vector<2x18x4xf32>,
    %cst = arith.constant 0.000000e+00 : f32
    %6 = vector.broadcast %cst : f32 to vector<128x128xf32>
    %c0_12 = arith.constant 0 : index
    %c0_13 = arith.constant 0 : index
    %c0_14 = arith.constant 0 : index
    %7 = vector.load %arg7[%c0_12, %c0_13, %c0_14] : memref<10x18x4xf32, #tpu.memory_space<vmem>>, vector<8x16x4xf32>
    %8 = vector.shape_cast %7 : vector<8x16x4xf32> to vector<128x4xf32>
    %c0_15 = arith.constant 0 : index
    %c0_16 = arith.constant 0 : index
    %c0_17 = arith.constant 0 : index
    %c0_18 = arith.constant 0 : index
    %9 = vector.load %arg4[%c0_15, %c0_16, %c0_17, %c0_18] : memref<3x3x4x128xf32, #tpu.memory_space<vmem>>, vector<1x1x4x128xf32>
    %10 = vector.shape_cast %9 : vector<1x1x4x128xf32> to vector<4x128xf32>
    %cst_19 = arith.constant dense<0.000000e+00> : vector<128x128xf32>
    %11 = tpu.matmul %8, %10, %cst_19 {dimension_numbers = #tpu.dot_dimension_numbers<[1], [0], [0], [1], [0, 0, 1, 1], [], []>} : vector<128x4xf32>, vector<4x128xf32>, vector<128x128xf32> -> vector<128x128xf32>
    %12 = arith.addf %6, %11 : vector<128x128xf32>
    %c0_20 = arith.constant 0 : index
    %c1 = arith.constant 1 : index
    %c0_21 = arith.constant 0 : index
    %13 = vector.load %arg7[%c0_20, %c1, %c0_21] : memref<10x18x4xf32, #tpu.memory_space<vmem>>, vector<8x16x4xf32>
    %14 = vector.shape_cast %13 : vector<8x16x4xf32> to vector<128x4xf32>
    %c0_22 = arith.constant 0 : index
    %c1_23 = arith.constant 1 : index
    %c0_24 = arith.constant 0 : index
    %c0_25 = arith.constant 0 : index
    %15 = vector.load %arg4[%c0_22, %c1_23, %c0_24, %c0_25] : memref<3x3x4x128xf32, #tpu.memory_space<vmem>>, vector<1x1x4x128xf32>
    %16 = vector.shape_cast %15 : vector<1x1x4x128xf32> to vector<4x128xf32>
    %cst_26 = arith.constant dense<0.000000e+00> : vector<128x128xf32>
    %17 = tpu.matmul %14, %16, %cst_26 {dimension_numbers = #tpu.dot_dimension_numbers<[1], [0], [0], [1], [0, 0, 1, 1], [], []>} : vector<128x4xf32>, vector<4x128xf32>, vector<128x128xf32> -> vector<128x128xf32>
    %18 = arith.addf %12, %17 : vector<128x128xf32>
    %c0_27 = arith.constant 0 : index
    %c2 = arith.constant 2 : index
    %c0_28 = arith.constant 0 : index
    %19 = vector.load %arg7[%c0_27, %c2, %c0_28] : memref<10x18x4xf32, #tpu.memory_space<vmem>>, vector<8x16x4xf32>
    %20 = vector.shape_cast %19 : vector<8x16x4xf32> to vector<128x4xf32>
    %c0_29 = arith.constant 0 : index
    %c2_30 = arith.constant 2 : index
    %c0_31 = arith.constant 0 : index
    %c0_32 = arith.constant 0 : index
    %21 = vector.load %arg4[%c0_29, %c2_30, %c0_31, %c0_32] : memref<3x3x4x128xf32, #tpu.memory_space<vmem>>, vector<1x1x4x128xf32>
    %22 = vector.shape_cast %21 : vector<1x1x4x128xf32> to vector<4x128xf32>
    %cst_33 = arith.constant dense<0.000000e+00> : vector<128x128xf32>
    %23 = tpu.matmul %20, %22, %cst_33 {dimension_numbers = #tpu.dot_dimension_numbers<[1], [0], [0], [1], [0, 0, 1, 1], [], []>} : vector<128x4xf32>, vector<4x128xf32>, vector<128x128xf32> -> vector<128x128xf32>
    %24 = arith.addf %18, %23 : vector<128x128xf32>
    %c1_34 = arith.constant 1 : index
    %c0_35 = arith.constant 0 : index
    %c0_36 = arith.constant 0 : index
    %25 = vector.load %arg7[%c1_34, %c0_35, %c0_36] : memref<10x18x4xf32, #tpu.memory_space<vmem>>, vector<8x16x4xf32>
    %26 = vector.shape_cast %25 : vector<8x16x4xf32> to vector<128x4xf32>
    %c1_37 = arith.constant 1 : index
    %c0_38 = arith.constant 0 : index
    %c0_39 = arith.constant 0 : index
    %c0_40 = arith.constant 0 : index
    %27 = vector.load %arg4[%c1_37, %c0_38, %c0_39, %c0_40] : memref<3x3x4x128xf32, #tpu.memory_space<vmem>>, vector<1x1x4x128xf32>
    %28 = vector.shape_cast %27 : vector<1x1x4x128xf32> to vector<4x128xf32>
    %cst_41 = arith.constant dense<0.000000e+00> : vector<128x128xf32>
    %29 = tpu.matmul %26, %28, %cst_41 {dimension_numbers = #tpu.dot_dimension_numbers<[1], [0], [0], [1], [0, 0, 1, 1], [], []>} : vector<128x4xf32>, vector<4x128xf32>, vector<128x128xf32> -> vector<128x128xf32>
    %30 = arith.addf %24, %29 : vector<128x128xf32>
    %c1_42 = arith.constant 1 : index
    %c1_43 = arith.constant 1 : index
    %c0_44 = arith.constant 0 : index
    %31 = vector.load %arg7[%c1_42, %c1_43, %c0_44] : memref<10x18x4xf32, #tpu.memory_space<vmem>>, vector<8x16x4xf32>
    %32 = vector.shape_cast %31 : vector<8x16x4xf32> to vector<128x4xf32>
    %c1_45 = arith.constant 1 : index
    %c1_46 = arith.constant 1 : index
    %c0_47 = arith.constant 0 : index
    %c0_48 = arith.constant 0 : index
    %33 = vector.load %arg4[%c1_45, %c1_46, %c0_47, %c0_48] : memref<3x3x4x128xf32, #tpu.memory_space<vmem>>, vector<1x1x4x128xf32>
    %34 = vector.shape_cast %33 : vector<1x1x4x128xf32> to vector<4x128xf32>
    %cst_49 = arith.constant dense<0.000000e+00> : vector<128x128xf32>
    %35 = tpu.matmul %32, %34, %cst_49 {dimension_numbers = #tpu.dot_dimension_numbers<[1], [0], [0], [1], [0, 0, 1, 1], [], []>} : vector<128x4xf32>, vector<4x128xf32>, vector<128x128xf32> -> vector<128x128xf32>
    %36 = arith.addf %30, %35 : vector<128x128xf32>
    %c1_50 = arith.constant 1 : index
    %c2_51 = arith.constant 2 : index
    %c0_52 = arith.constant 0 : index
    %37 = vector.load %arg7[%c1_50, %c2_51, %c0_52] : memref<10x18x4xf32, #tpu.memory_space<vmem>>, vector<8x16x4xf32>
    %38 = vector.shape_cast %37 : vector<8x16x4xf32> to vector<128x4xf32>
    %c1_53 = arith.constant 1 : index
    %c2_54 = arith.constant 2 : index
    %c0_55 = arith.constant 0 : index
    %c0_56 = arith.constant 0 : index
    %39 = vector.load %arg4[%c1_53, %c2_54, %c0_55, %c0_56] : memref<3x3x4x128xf32, #tpu.memory_space<vmem>>, vector<1x1x4x128xf32>
    %40 = vector.shape_cast %39 : vector<1x1x4x128xf32> to vector<4x128xf32>
    %cst_57 = arith.constant dense<0.000000e+00> : vector<128x128xf32>
    %41 = tpu.matmul %38, %40, %cst_57 {dimension_numbers = #tpu.dot_dimension_numbers<[1], [0], [0], [1], [0, 0, 1, 1], [], []>} : vector<128x4xf32>, vector<4x128xf32>, vector<128x128xf32> -> vector<128x128xf32>
    %42 = arith.addf %36, %41 : vector<128x128xf32>
    %c2_58 = arith.constant 2 : index
    %c0_59 = arith.constant 0 : index
    %c0_60 = arith.constant 0 : index
    %43 = vector.load %arg7[%c2_58, %c0_59, %c0_60] : memref<10x18x4xf32, #tpu.memory_space<vmem>>, vector<8x16x4xf32>
    %44 = vector.shape_cast %43 : vector<8x16x4xf32> to vector<128x4xf32>
    %c2_61 = arith.constant 2 : index
    %c0_62 = arith.constant 0 : index
    %c0_63 = arith.constant 0 : index
    %c0_64 = arith.constant 0 : index
    %45 = vector.load %arg4[%c2_61, %c0_62, %c0_63, %c0_64] : memref<3x3x4x128xf32, #tpu.memory_space<vmem>>, vector<1x1x4x128xf32>
    %46 = vector.shape_cast %45 : vector<1x1x4x128xf32> to vector<4x128xf32>
    %cst_65 = arith.constant dense<0.000000e+00> : vector<128x128xf32>
    %47 = tpu.matmul %44, %46, %cst_65 {dimension_numbers = #tpu.dot_dimension_numbers<[1], [0], [0], [1], [0, 0, 1, 1], [], []>} : vector<128x4xf32>, vector<4x128xf32>, vector<128x128xf32> -> vector<128x128xf32>
    %48 = arith.addf %42, %47 : vector<128x128xf32>
    %c2_66 = arith.constant 2 : index
    %c1_67 = arith.constant 1 : index
    %c0_68 = arith.constant 0 : index
    %49 = vector.load %arg7[%c2_66, %c1_67, %c0_68] : memref<10x18x4xf32, #tpu.memory_space<vmem>>, vector<8x16x4xf32>
    %50 = vector.shape_cast %49 : vector<8x16x4xf32> to vector<128x4xf32>
    %c2_69 = arith.constant 2 : index
    %c1_70 = arith.constant 1 : index
    %c0_71 = arith.constant 0 : index
    %c0_72 = arith.constant 0 : index
    %51 = vector.load %arg4[%c2_69, %c1_70, %c0_71, %c0_72] : memref<3x3x4x128xf32, #tpu.memory_space<vmem>>, vector<1x1x4x128xf32>
    %52 = vector.shape_cast %51 : vector<1x1x4x128xf32> to vector<4x128xf32>
    %cst_73 = arith.constant dense<0.000000e+00> : vector<128x128xf32>
    %53 = tpu.matmul %50, %52, %cst_73 {dimension_numbers = #tpu.dot_dimension_numbers<[1], [0], [0], [1], [0, 0, 1, 1], [], []>} : vector<128x4xf32>, vector<4x128xf32>, vector<128x128xf32> -> vector<128x128xf32>
    %54 = arith.addf %48, %53 : vector<128x128xf32>
    %c2_74 = arith.constant 2 : index
    %c2_75 = arith.constant 2 : index
    %c0_76 = arith.constant 0 : index
    %55 = vector.load %arg7[%c2_74, %c2_75, %c0_76] : memref<10x18x4xf32, #tpu.memory_space<vmem>>, vector<8x16x4xf32>
    %56 = vector.shape_cast %55 : vector<8x16x4xf32> to vector<128x4xf32>
    %c2_77 = arith.constant 2 : index
    %c2_78 = arith.constant 2 : index
    %c0_79 = arith.constant 0 : index
    %c0_80 = arith.constant 0 : index
    %57 = vector.load %arg4[%c2_77, %c2_78, %c0_79, %c0_80] : memref<3x3x4x128xf32, #tpu.memory_space<vmem>>, vector<1x1x4x128xf32>
    %58 = vector.shape_cast %57 : vector<1x1x4x128xf32> to vector<4x128xf32>
    %cst_81 = arith.constant dense<0.000000e+00> : vector<128x128xf32>
    %59 = tpu.matmul %56, %58, %cst_81 {dimension_numbers = #tpu.dot_dimension_numbers<[1], [0], [0], [1], [0, 0, 1, 1], [], []>} : vector<128x4xf32>, vector<4x128xf32>, vector<128x128xf32> -> vector<128x128xf32>
    %60 = arith.addf %54, %59 : vector<128x128xf32>
    %c0_82 = arith.constant 0 : index
    %c0_83 = arith.constant 0 : index
    %61 = vector.load %arg5[%c0_82, %c0_83] : memref<1x128xf32, #tpu.memory_space<vmem>>, vector<1x128xf32>
    %62 = vector.broadcast %61 : vector<1x128xf32> to vector<128x128xf32>
    %63 = arith.mulf %60, %62 : vector<128x128xf32>
    %64 = vector.shape_cast %63 : vector<128x128xf32> to vector<8x16x128xf32>
    %c0_84 = arith.constant 0 : index
    %c0_85 = arith.constant 0 : index
    %c0_86 = arith.constant 0 : index
    %c0_87 = arith.constant 0 : index
    %65 = vector.load %arg6[%c0_84, %c0_85, %c0_86, %c0_87] : memref<1x8x16x128xf32, #tpu.memory_space<vmem>>, vector<1x8x16x128xf32>
    %66 = vector.shape_cast %65 : vector<1x8x16x128xf32> to vector<8x16x128xf32>
    %67 = vector.shape_cast %64 : vector<8x16x128xf32> to vector<1x8x16x128xf32>
    tpu.vector_store %arg6[%c0_84, %c0_85, %c0_86, %c0_87], %67 {strides = array<i32>} : memref<1x8x16x128xf32, #tpu.memory_space<vmem>>, vector<1x8x16x128xf32>,
    return
  }
  func.func @transform_0(%arg0: i32, %arg1: i32) -> (i32, i32, i32, i32) {
    %c0_i32 = arith.constant 0 : i32
    %c0_i32_0 = arith.constant 0 : i32
    %c0_i32_1 = arith.constant 0 : i32
    return %arg0, %arg1, %c0_i32, %c0_i32_0 : i32, i32, i32, i32
  }
  func.func @transform_1(%arg0: i32, %arg1: i32) -> (i32, i32, i32, i32) {
    %c1_i32 = arith.constant 1 : i32
    %0 = arith.addi %arg1, %c1_i32 : i32
    %c4_i32 = arith.constant 4 : i32
    %1 = arith.muli %0, %c4_i32 : i32
    %c0_i32 = arith.constant 0 : i32
    %c0_i32_0 = arith.constant 0 : i32
    %c0_i32_1 = arith.constant 0 : i32
    return %arg0, %1, %c0_i32, %c0_i32_0 : i32, i32, i32, i32
  }
  func.func @transform_2(%arg0: i32, %arg1: i32) -> (i32, i32, i32, i32) {
    %c0_i32 = arith.constant 0 : i32
    %c0_i32_0 = arith.constant 0 : i32
    %c0_i32_1 = arith.constant 0 : i32
    %c0_i32_2 = arith.constant 0 : i32
    %c0_i32_3 = arith.constant 0 : i32
    return %c0_i32, %c0_i32_0, %c0_i32_1, %c0_i32_2 : i32, i32, i32, i32
  }
  func.func @transform_3(%arg0: i32, %arg1: i32) -> (i32, i32) {
    %c0_i32 = arith.constant 0 : i32
    %c0_i32_0 = arith.constant 0 : i32
    %c0_i32_1 = arith.constant 0 : i32
    return %c0_i32, %c0_i32_0 : i32, i32
  }
  func.func @transform_4(%arg0: i32, %arg1: i32) -> (i32, i32, i32, i32) {
    %c0_i32 = arith.constant 0 : i32
    %c0_i32_0 = arith.constant 0 : i32
    %c0_i32_1 = arith.constant 0 : i32
    return %arg0, %arg1, %c0_i32, %c0_i32_0 : i32, i32, i32, i32
  }
}

</mosaic_0001>

<bundles_post_ra>
// kernel: tpu_custom_call.1
= control target key start
LH: loop header
LB: loop body
LE: loop exit
PB: predicated region body
PF: predicated region fallthrough
CT: control target
= control target key end

     0   :  { %9 = vsyncpa [#allocation4], 0  ;;  %s4166_s0 = inlined_call_operand.vmem [shape: f32[2,18,18,4], index: 0, kind: input, shape index: {}]   ;;  %s4167_s1 = inlined_call_operand.vmem [shape: f32[2,18,18,4], index: 1, kind: input, shape index: {}]   ;;  %s4168_s2 = inlined_call_operand.vmem [shape: f32[3,3,4,128], index: 2, kind: input, shape index: {}]   ;;  %s4169_s3 = inlined_call_operand.vmem [shape: f32[1,128], index: 3, kind: input, shape index: {}]   ;;  %s4170_s4 = inlined_call_operand.hbm [shape: f32[2,16,16,128], index: 4, kind: output, shape index: {}]  }
   0x1   :  { %11 = vsyncpa [#allocation4 + $0x1], 0  ;;  %s3482_s15 = smov 0   ;;  %s3484_s16 = smov 0  }
   0x2   :  { %s3486_s17 = smov 0   ;;  %s3488_s18 = smov 0  }
   0x3   :  { %s3490_s19 = smov 0   ;;  %s3492_s20 = smov 0  }
   0x4   :  { %s3494_s21 = smov 0   ;;  %s3496_s22 = smov 0  }
   0x5 LB: > { %s2573_s23 = sadd.s32 4294967295, %s3452_s22   ;;  %s2574_s24 = sadd.s32 4294967294, %s3452_s22   ;;  %s3452_s22 = sphi %s3496_s22, %s17_s22   ;;  %s3448_s21 = sphi %s3494_s21, %s4180_s21   ;;  %s3444_s20 = sphi %s3492_s20, %s4179_s20   ;;  %s3440_s19 = sphi %s3490_s19, %s4178_s19   ;;  %s3436_s18 = sphi %s3488_s18, %s4177_s18   ;;  %s3432_s17 = sphi %s3486_s17, %s4176_s17   ;;  %s3428_s16 = sphi %s3484_s16, %s4175_s16   ;;  %s3424_s15 = sphi %s3482_s15, %s4174_s15  }
   0x6   : > { %s26_s25 = sadd.s32 1, %s3444_s20  ;;  %s29_s26 = sadd.s32 1, %s3448_s21 }
   0x7   : > { %p27_p0 = scmp.ge.s32.totalorder %s26_s25, 2  ;;  %p150_p1 = scmp.ne.s32.totalorder %s3432_s17, %s3428_s16 }
   0x8   : > { %p151_p2 = scmp.eq.s32.totalorder %s2573_s23, 3  ;;  %p156_p5 = scmp.ne.s32.totalorder %s3428_s16, %s3424_s15 }
   0x9   : > { %s4182_s25 = smov (%p27_p0, %s26_s25), 0  ;;  %s4184_s26 = smov (!%p27_p0, %s29_s26), %s3448_s21 }
   0xa   : > { %s136_s27 = ssub.s32 %s3444_s20, %s4182_s25  ;;  %p3533_p3 = por %p151_p2, %p150_p1 }
   0xb   : > { %p31_p4 = scmp.ge.s32.totalorder %s4184_s26, 2  ;;  %p157_p6 = scmp.eq.s32.totalorder %s2574_s24, 3 }
   0xc   : > { %p2579_p7 = scmp.ge.s32.totalorder %s3452_s22, 1  ;;  %p223_p9 = scmp.lt.s32.totalorder %s3452_s22, 5 }
   0xd   : > { %s4186_s26 = smov (%p31_p4, %s4184_s26), 0  ;;  %p3542_p8 = por %p157_p6, %p156_p5 }
   0xe   : > { %s135_s30 = ssub.s32 %s3448_s21, %s4186_s26  ;;  %s140_s5 = sadd.s32 1, %s3432_s17 }
   0xf   : > { %s137_s6 = sor.u32 %s136_s27, %s135_s30  ;;  %p224_p10 = pnand %p2579_p7, %p223_p9 }
  0x10   : > { %p138_p11 = scmp.eq.s32.totalorder %s137_s6, 0  ;;  %v2586_v0 = vld [vmem:[%s4168_s2 + $0x4] sm:$0xf] (!%p224_p10)  ;;  %vm454_vm0 = vcmask (!%p224_p10), 1043456   ;;  %v3559_v1 = vld [vmem:[%s4168_s2 + $0x10] sm:$0xf] (!%p224_p10) }
  0x11   : > { %227 = sbr.rel (%p224_p10) target bundleno = 418 (0x1a2), region = 36  ;;  %s3562_s12 = sshll.u32 (!%p224_p10), %s3436_s18, 3  ;;  %2918 = vmatprep.subr.msk.mxu1 (!%p224_p10), %vm454_vm0, %v2586_v0  ;;  %3022 = vmatprep.subr.msk.mxu0 (!%p224_p10), %vm454_vm0, %v3559_v1  ;;  %v3572_v2 = vld [vmem:[%s4168_s2] sm:$0xf] (!%p224_p10)  ;;  %v3580_v3 = vld [vmem:[%s4168_s2 + $0x14] sm:$0xf] (!%p224_p10) }
  0x12   : > { %s3551_s7 = scalar_select %p138_p11, %s3432_s17, %s140_s5  }
  0x13   : > { %p277_p12 = scmp.lt.s32.totalorder (!%p224_p10), %s3440_s19, 1  ;;  %p279_p13 = scmp.lt.s32.totalorder (!%p224_p10), %s3562_s12, 17  ;;  %2919 = vmatpush3.msk.msra.mxu1 (!%p224_p10), %vm454_vm0, %v2586_v0  ;;  %3023 = vmatpush3.msk.msra.mxu0 (!%p224_p10), %vm454_vm0, %v3559_v1  ;;  %vm332_vm1 = vcmask (!%p224_p10), 31744   ;;  %vm335_vm2 = vcmask (!%p224_p10), 25600   ;;  %v2693_v33 = vld [vmem:[%s4168_s2 + $0x18] sm:$0xf] (!%p224_p10) }
  0x14   : > { %2944 = vmatprep.subr.msk.mxu1 (!%p224_p10), %vm454_vm0, %v3572_v2  ;;  %3048 = vmatprep.subr.msk.mxu0 (!%p224_p10), %vm454_vm0, %v3580_v3  ;;  %s2764_s8 = sadd.s32 (!%p224_p10), 8, %s3562_s12  ;;  %v3670_v34 = vld [vmem:[%s4168_s2 + $0x8] sm:$0xf] (!%p224_p10)  ;;  %v3734_v50 = vld [vmem:[%s4168_s2 + $0x1c] sm:$0xf] (!%p224_p10) }
  0x15   : > { %p3599_p0 = scmp.lt.s32.totalorder (!%p224_p10), %s2764_s8, 17 }
  0x18   : > { %s3583_s27 = scalar_select %p277_p12, %s3440_s19, 1 }
  0x19   : > { %s280_s30 = scalar_select %p279_p13, %s3562_s12, 17 }
  0x1a   : > { %s3283_s5 = smul.u32 54, %s3583_s27  ;;  %s4188_s8 = smov (!%p3599_p0, %s2764_s8), 17 }
  0x1b   : > { %s3282_s6 = smul.u32 3, %s280_s30 }
  0x1c   : > { %s3284_s23 = smul.u32 3, %s4188_s8 }
  0x1d   : > { %s283_s9 = sadd.s32 %s3283_s5, %s3282_s6  ;;  %s268_s6 = sand.u32 1, %s3428_s16  }
  0x1e   : > { %s2582_s10 = sshll.u32 %s283_s9, 3  ;;  %s301_s9 = sadd.s32 %s3284_s23, %s3283_s5 }
  0x1f   : > { %s3597_s14 = scalar_lea.vmem %s4166_s0, %s2582_s10  ;;  %s2585_s27 = sshll.u32 %s301_s9, 3 }
  0x20   : > { %v308_v4 = vld [vmem:[%s3597_s14] sm:$0xff]  ;;  %v309_v5 = vld [vmem:[%s3597_s14 + $0x8] sm:$0xff]  ;;  %v311_v6 = vld [vmem:[%s3597_s14 + $0x18] sm:$0xff]  ;;  %s303_s11 = scalar_lea.vmem %s4167_s1, %s2585_s27  ;;  %s2580_s8 = sshll.u32 %s268_s6, 7 }
  0x21   : > { %333 = vst.msk [vmem:[#allocation2] sm:$0xff] %vm332_vm1, %v308_v4  ;;  %334 = vst.msk [vmem:[#allocation2 + $0x8] sm:$0xff] %vm332_vm1, %v309_v5  ;;  %v312_v7 = vld [vmem:[%s3597_s14 + $0x20] sm:$0xff]  ;;  %v310_v8 = vld [vmem:[%s3597_s14 + $0x10] sm:$0x3]  ;;  %s4070_s5 = scalar_lea.vmem [#allocation3], %s2580_s8 }
  0x22   : > { %337 = vst.msk [vmem:[#allocation2 + $0x18] sm:$0xff] %vm332_vm1, %v311_v6  ;;  %v313_v9 = vld [vmem:[%s3597_s14 + $0x28] sm:$0x3]  ;;  %338 = vst.msk [vmem:[#allocation2 + $0x20] sm:$0xff] %vm332_vm1, %v312_v7  ;;  %v314_v10 = vld [vmem:[%s3597_s14 + $0x30] sm:$0xff]  ;;  %s2762_s10 = sshll.u32 %s3436_s18, 4 }
  0x23   : > { %336 = vst.msk [vmem:[#allocation2 + $0x10] sm:$0x3] %vm335_vm2, %v310_v8  ;;  %339 = vst.msk [vmem:[#allocation2 + $0x28] sm:$0x3] %vm335_vm2, %v313_v9  ;;  %v315_v11 = vld [vmem:[%s3597_s14 + $0x38] sm:$0xff]  ;;  %v317_v13 = vld [vmem:[%s3597_s14 + $0x48] sm:$0xff] }
  0x24   : > { %v316_v12 = vld [vmem:[%s3597_s14 + $0x40] sm:$0x3]  ;;  %340 = vst.msk [vmem:[#allocation2 + $0x30] sm:$0xff] %vm332_vm1, %v314_v10  ;;  %341 = vst.msk [vmem:[#allocation2 + $0x38] sm:$0xff] %vm332_vm1, %v315_v11  ;;  %v318_v14 = vld [vmem:[%s3597_s14 + $0x50] sm:$0xff]  ;;  %s4114_s24 = scalar_lea.sflag [#allocation4], %s268_s6 }
  0x25   : > { %342 = vst.msk [vmem:[#allocation2 + $0x40] sm:$0x3] %vm335_vm2, %v316_v12  ;;  %v319_v15 = vld [vmem:[%s3597_s14 + $0x58] sm:$0x3]  ;;  %v320_v16 = vld [vmem:[%s3597_s14 + $0x60] sm:$0xff]  ;;  %v321_v17 = vld [vmem:[%s3597_s14 + $0x68] sm:$0xff] }
  0x26   : > { %343 = vst.msk [vmem:[#allocation2 + $0x48] sm:$0xff] %vm332_vm1, %v317_v13  ;;  %344 = vst.msk [vmem:[#allocation2 + $0x50] sm:$0xff] %vm332_vm1, %v318_v14  ;;  %v322_v18 = vld [vmem:[%s3597_s14 + $0x70] sm:$0x3]  ;;  %v323_v19 = vld [vmem:[%s3597_s14 + $0x78] sm:$0xff]  ;;  %s3454_s8 = smov [#allocation3]  }
  0x27   : > { %345 = vst.msk [vmem:[#allocation2 + $0x58] sm:$0x3] %vm335_vm2, %v319_v15  ;;  %348 = vst.msk [vmem:[#allocation2 + $0x70] sm:$0x3] %vm335_vm2, %v322_v18  ;;  %v324_v20 = vld [vmem:[%s3597_s14 + $0x80] sm:$0xff]  ;;  %v326_v22 = vld [vmem:[%s3597_s14 + $0x90] sm:$0xff] }
  0x28   : > { %346 = vst.msk [vmem:[#allocation2 + $0x60] sm:$0xff] %vm332_vm1, %v320_v16  ;;  %347 = vst.msk [vmem:[#allocation2 + $0x68] sm:$0xff] %vm332_vm1, %v321_v17  ;;  %v325_v21 = vld [vmem:[%s3597_s14 + $0x88] sm:$0x3]  ;;  %v327_v23 = vld [vmem:[%s3597_s14 + $0x98] sm:$0xff]  ;;  %s3362_s9 = sshll.u32 %s3454_s8, 4  ;;  %s3363_s9 = int_to_ptr.vmem [resolvable:$false] %s3362_s9 }
  0x29   : > { %349 = vst.msk [vmem:[#allocation2 + $0x78] sm:$0xff] %vm332_vm1, %v323_v19  ;;  %350 = vst.msk [vmem:[#allocation2 + $0x80] sm:$0xff] %vm332_vm1, %v324_v20  ;;  %v328_v24 = vld [vmem:[%s3597_s14 + $0xa0] sm:$0x3]  ;;  %v329_v25 = vld [vmem:[%s3597_s14 + $0xa8] sm:$0xff]  ;;  %s3364_s27 = scalar_lea.vmem %s3363_s9, 4096 }
  0x2a   : > { %351 = vst.msk [vmem:[#allocation2 + $0x88] sm:$0x3] %vm335_vm2, %v325_v21  ;;  %354 = vst.msk [vmem:[#allocation2 + $0xa0] sm:$0x3] %vm335_vm2, %v328_v24  ;;  %v330_v26 = vld [vmem:[%s3597_s14 + $0xb0] sm:$0xff]  ;;  %v388_v28 = vld [vmem:[#allocation2 + $0x1] sm:$0xff] }
  0x2b   : > { %352 = vst.msk [vmem:[#allocation2 + $0x90] sm:$0xff] %vm332_vm1, %v326_v22  ;;  %353 = vst.msk [vmem:[#allocation2 + $0x98] sm:$0xff] %vm332_vm1, %v327_v23  ;;  %v331_v27 = vld [vmem:[%s3597_s14 + $0xb8] sm:$0x3]  ;;  %2920 = vmatprep.mubr.msk.f32.mxu1 %vm332_vm1, %v388_v28  ;;  %v389_v30 = vld [vmem:[#allocation2 + $0x9] sm:$0xff] }
  0x2c   : > { %355 = vst.msk [vmem:[#allocation2 + $0xa8] sm:$0xff] %vm332_vm1, %v329_v25  ;;  %356 = vst.msk [vmem:[#allocation2 + $0xb0] sm:$0xff] %vm332_vm1, %v330_v26  ;;  %v1260_v29 = vld [vmem:[#allocation2 + $0x19] sm:$0xff]  ;;  %v1261_v31 = vld [vmem:[#allocation2 + $0x21] sm:$0xff]  ;;  %2921 = vmatmul.mubr.msk.f32.vlgmr.msra.gmra.mrb[0].mxu1 %vm332_vm1, %v389_v30 }
  0x2d   : > { %357 = vst.msk [vmem:[#allocation2 + $0xb8] sm:$0x3] %vm335_vm2, %v331_v27  ;;  %3024 = vmatprep.mubr.msk.f32.mxu0 %vm332_vm1, %v1260_v29  ;;  %v3659_v32 = vld [vmem:[#allocation2 + $0x31] sm:$0xff]  ;;  %2945 = vmatpush3.msk.msra.mxu1 %vm454_vm0, %v3572_v2  ;;  %v3677_v35 = vld [vmem:[#allocation2 + $0x39] sm:$0xff]  ;;  %v3681_v36 = vld [vmem:[#allocation2 + $0x49] sm:$0xff] }
  0x2e   : > { %3025 = vmatmul.mubr.msk.f32.vlgmr.msra.gmra.mrb[0].mxu0 %vm332_vm1, %v1261_v31  ;;  %2923 = vmatprep.mubr.msk.f32.mxu1 %vm332_vm1, %v1260_v29  ;;  %v3693_v37 = vld [vmem:[#allocation2 + $0x51] sm:$0xff]  ;;  %v358_v40 = vld [vmem:[%s303_s11] sm:$0xff]  ;;  %v359_v41 = vld [vmem:[%s303_s11 + $0x8] sm:$0xff] }
  0x2f   : > { %3049 = vmatpush3.msk.msra.mxu0 %vm454_vm0, %v3580_v3  ;;  %3027 = vmatprep.mubr.msk.f32.mxu0 %vm332_vm1, %v3659_v32  ;;  %v3695_v38 = vld [vmem:[#allocation2 + $0x61] sm:$0xff]  ;;  %v3708_v39 = vld [vmem:[#allocation2 + $0x69] sm:$0xff]  ;;  %365 = vst.msk [vmem:[#allocation2 + $0xc0] sm:$0xff] %vm332_vm1, %v358_v40  ;;  %366 = vst.msk [vmem:[#allocation2 + $0xc8] sm:$0xff] %vm332_vm1, %v359_v41 }
  0x30   : > { %3074 = vmatprep.subr.msk.mxu0 %vm454_vm0, %v2693_v33  ;;  %2924 = vmatmul.mubr.msk.f32.gmra.mrb[2].mxu1 %vm332_vm1, %v1261_v31  ;;  %v3710_v42 = vld [vmem:[#allocation2 + $0x1a] sm:$0xff]  ;;  %v360_v43 = vld [vmem:[%s303_s11 + $0x10] sm:$0x3]  ;;  %v3723_v44 = vld [vmem:[#allocation2 + $0x22] sm:$0xff] }
  0x31   : > { %2970 = vmatprep.subr.msk.mxu1 %vm454_vm0, %v3670_v34  ;;  %2926 = vmatprep.mubr.msk.f32.mxu1 %vm332_vm1, %v3659_v32  ;;  %367 = vst.msk [vmem:[#allocation2 + $0xd0] sm:$0x3] %vm335_vm2, %v360_v43  ;;  %v3725_v45 = vld [vmem:[#allocation2 + $0x79] sm:$0xff]  ;;  %v363_v49 = vld [vmem:[%s303_s11 + $0x28] sm:$0x3]  ;;  %v3752_v54 = vld [vmem:[#allocation2 + $0x4a] sm:$0xff] }
  0x32   : > { %3028 = vmatmul.mubr.msk.f32.gmra.mrb[2].mxu0 %vm332_vm1, %v3677_v35  ;;  %v3727_v46 = vld [vmem:[#allocation2 + $0x32] sm:$0xff]  ;;  %v362_v48 = vld [vmem:[%s303_s11 + $0x20] sm:$0xff]  ;;  %370 = vst.msk [vmem:[#allocation2 + $0xe8] sm:$0x3] %vm335_vm2, %v363_v49  ;;  %v3782_v60 = vld [vmem:[#allocation2 + $0x6a] sm:$0xff] }
  0x33   : > { %3030 = vmatprep.mubr.msk.f32.mxu0 %vm332_vm1, %v3681_v36  ;;  %v361_v47 = vld [vmem:[%s303_s11 + $0x18] sm:$0xff]  ;;  %369 = vst.msk [vmem:[#allocation2 + $0xe0] sm:$0xff] %vm332_vm1, %v362_v48  ;;  %v3743_v51 = vld [vmem:[#allocation2 + $0x81] sm:$0xff]  ;;  %v3768_v57 = vld [vmem:[#allocation2 + $0xa9] sm:$0xff]  ;;  %s2751_s11 = sshll.u32 %s3440_s19, 5  ;;  %s2467_s19 = sshll.u32 %s4070_s5, 4  ;;  %s4107_s19 = int_to_ptr.vmem [resolvable:$true] %s2467_s19 }
  0x34   : > { %2927 = vmatmul.mubr.msk.f32.gmra.mrb[4].mxu1 %vm332_vm1, %v3677_v35  ;;  %368 = vst.msk [vmem:[#allocation2 + $0xd8] sm:$0xff] %vm332_vm1, %v361_v47  ;;  %v3748_v52 = vld [vmem:[#allocation2 + $0x3a] sm:$0xff]  ;;  %v3750_v53 = vld [vmem:[#allocation2 + $0x91] sm:$0xff]  ;;  %v3770_v58 = vld [vmem:[#allocation2 + $0x62] sm:$0xff]  ;;  %s2464_s13 = sadd.s32 %s2762_s10, %s2751_s11  ;;  %s3358_s30 = scalar_lea.vmem %s4107_s19, 2048 }
  0x35   : > { %2929 = vmatprep.mubr.msk.f32.mxu1 %vm332_vm1, %v3681_v36  ;;  %v3762_v55 = vld [vmem:[#allocation2 + $0x99] sm:$0xff]  ;;  %v3778_v59 = vld [vmem:[#allocation2 + $0xb1] sm:$0xff]  ;;  %v372_v63 = vld [vmem:[#allocation2 + $0x8] sm:$0xff]  ;;  %s2752_s18 = sshll.u32 %s2464_s13, 7  ;;  %p3359_p1 = scmp.ne.s32.totalorder %s4107_s19, %s3358_s30 }
  0x36   : > { %3031 = vmatmul.mubr.msk.f32.gmra.mrb[4].mxu0 %vm332_vm1, %v3693_v37  ;;  %v3766_v56 = vld [vmem:[#allocation2 + $0x52] sm:$0xff]  ;;  %v371_v61 = vld [vmem:[#allocation2] sm:$0xff]  ;;  %v2639_v4 = vld [vmem:[%s4168_s2 + $0xc] sm:$0xf]  ;;  %s4105_s23 = scalar_lea.hbm %s4170_s4, %s2752_s18  ;;  %p3365_p5 = scmp.lt.s32.totalorder %s4107_s19, %s3363_s9 }
  0x37   : > { %3033 = vmatprep.mubr.msk.f32.mxu0 %vm332_vm1, %v3695_v38  ;;  %v3784_v62 = vld [vmem:[#allocation2 + $0x7a] sm:$0xff]  ;;  %v3793_v0 = vld [vmem:[#allocation2 + $0x82] sm:$0xff]  ;;  %v3797_v3 = vld [vmem:[#allocation2 + $0x92] sm:$0xff]  ;;  %p3360_p2 = pnand %p3359_p1, %p3533_p3  ;;  %p3366_p6 = scmp.lt.s32.totalorder %s3364_s27, %s3358_s30 }
  0x38   : > { %2930 = vmatmul.mubr.msk.f32.gmra.mrb[6].mxu1 %vm332_vm1, %v3693_v37  ;;  %v3795_v2 = vld [vmem:[#allocation2 + $0x18] sm:$0xff]  ;;  %v3807_v5 = vld [vmem:[#allocation2 + $0x20] sm:$0xff]  ;;  %v3815_v7 = vld [vmem:[#allocation2 + $0x30] sm:$0xff] }
  0x39   : > { %2932 = vmatprep.mubr.msk.f32.mxu1 %vm332_vm1, %v3695_v38  ;;  %v3813_v6 = vld [vmem:[#allocation2 + $0x9a] sm:$0xff]  ;;  %v3817_v8 = vld [vmem:[#allocation2 + $0xaa] sm:$0xff]  ;;  %v3830_v10 = vld [vmem:[#allocation2 + $0xb2] sm:$0xff]  ;;  %p3361_p4 = pneg %p3360_p2  ;;  %p3367_p7 = por %p3366_p6, %p3365_p5 }
  0x3a   : > { %3034 = vmatmul.mubr.msk.f32.gmra.mrb[6].mxu0 %vm332_vm1, %v3708_v39  ;;  %v3826_v9 = vld [vmem:[#allocation2 + $0x38] sm:$0xff]  ;;  %v3832_v11 = vld [vmem:[#allocation2 + $0x48] sm:$0xff]  ;;  %v3842_v13 = vld [vmem:[#allocation2 + $0x50] sm:$0xff] }
  0x3b   : > { %3050 = vmatprep.mubr.msk.f32.mxu0 %vm332_vm1, %v3710_v42  ;;  %v3834_v12 = vld [vmem:[#allocation2 + $0xc2] sm:$0xff]  ;;  %v3846_v14 = vld [vmem:[#allocation2 + $0xca] sm:$0xff]  ;;  %v3860_v17 = vld [vmem:[#allocation2 + $0x78] sm:$0xff]  ;;  %p3368_p9 = pnand %p3367_p7, %p3361_p4 }
  0x3c   : > { %2933 = vmatmul.mubr.msk.f32.gmra.mrb[8].mxu1 %vm332_vm1, %v3708_v39  ;;  %v3848_v15 = vld [vmem:[#allocation2 + $0x60] sm:$0xff]  ;;  %v3856_v16 = vld [vmem:[#allocation2 + $0x68] sm:$0xff]  ;;  %v3877_v20 = vld [vmem:[#allocation2 + $0x90] sm:$0xff] }
  0x3d   : > { %2935 = vmatprep.mubr.msk.f32.mxu1 %vm332_vm1, %v3725_v45  ;;  %v2729_v18 = vld [vmem:[%s4168_s2 + $0x20] sm:$0xf]  ;;  %v3886_v21 = vld [vmem:[#allocation2 + $0x98] sm:$0xff]  ;;  %v3890_v22 = vld [vmem:[#allocation2 + $0xa8] sm:$0xff] }
  0x3e   : > { %3051 = vmatmul.mubr.msk.f32.vlgmr.msra.gmra.mrb[0].mxu0 %vm332_vm1, %v3723_v44  ;;  %v3871_v19 = vld [vmem:[#allocation2 + $0x80] sm:$0xff]  ;;  %v3898_v23 = vld [vmem:[#allocation2 + $0xb0] sm:$0xff]  ;;  %v1734_v27 = vld [vmem:[#allocation2 + $0xc8] sm:$0xff] }
  0x3f   : > { %3075 = vmatpush3.msk.msra.mxu0 %vm454_vm0, %v2693_v33  ;;  %3053 = vmatprep.mubr.msk.f32.mxu0 %vm332_vm1, %v3727_v46  ;;  %v799_v24 = vld [vmem:[#allocation2 + $0x2] sm:$0xff]  ;;  %v800_v25 = vld [vmem:[#allocation2 + $0xa] sm:$0xff]  ;;  %v1735_v28 = vld [vmem:[#allocation2 + $0xd8] sm:$0xff] }
  0x40   : > { %3100 = vmatprep.subr.msk.mxu0 %vm454_vm0, %v3734_v50  ;;  %2936 = vmatmul.mubr.msk.f32.gmra.mrb[10].mxu1 %vm332_vm1, %v3743_v51  ;;  %v3917_v26 = vld [vmem:[#allocation2 + $0xc0] sm:$0xff] }
  0x41   : > { %2938 = vmatprep.mubr.msk.f32.mxu1 %vm332_vm1, %v3750_v53  ;;  %v1736_v29 = vld [vmem:[#allocation2 + $0xe0] sm:$0xff] }
  0x42   : > { %3054 = vmatmul.mubr.msk.f32.gmra.mrb[2].mxu0 %vm332_vm1, %v3748_v52  ;;  %v1963_v30 = vld [vmem:[#allocation2 + $0xc1] sm:$0xff]  ;;  %v1965_v31 = vld [vmem:[#allocation2 + $0xd9] sm:$0xff] }
  0x43   : > { %3056 = vmatprep.mubr.msk.f32.mxu0 %vm332_vm1, %v3752_v54  ;;  %v2195_v33 = vld [vmem:[#allocation2 + $0xda] sm:$0xff] }
  0x44   : > { %2939 = vmatmul.mubr.msk.f32.gmra.mrb[12].mxu1 %vm332_vm1, %v3762_v55 }
  0x45   : > { %2941 = vmatprep.mubr.msk.f32.mxu1 %vm332_vm1, %v3768_v57 }
  0x46   : > { %3057 = vmatmul.mubr.msk.f32.gmra.mrb[4].mxu0 %vm332_vm1, %v3766_v56 }
  0x47   : > { %3059 = vmatprep.mubr.msk.f32.mxu0 %vm332_vm1, %v3770_v58 }
  0x48   : > { %2942 = vmatmul.mubr.msk.f32.gmra.mrb[14].mxu1 %vm332_vm1, %v3778_v59 }
  0x49   : > { %2946 = vmatprep.mubr.msk.f32.mxu1 %vm332_vm1, %v371_v61 }
  0x4a   : > { %3060 = vmatmul.mubr.msk.f32.gmra.mrb[6].mxu0 %vm332_vm1, %v3782_v60 }
  0x4b   : > { %3062 = vmatprep.mubr.msk.f32.mxu0 %vm332_vm1, %v3784_v62 }
  0x4c   : > { %2947 = vmatmul.mubr.msk.f32.vlgmr.msra.gmra.mrb[0].mxu1 %vm332_vm1, %v372_v63 }
  0x4d   : > { %2971 = vmatpush3.msk.msra.mxu1 %vm454_vm0, %v3670_v34  ;;  %2949 = vmatprep.mubr.msk.f32.mxu1 %vm332_vm1, %v3795_v2  ;;  %v2196_v34 = vld [vmem:[#allocation2 + $0xe2] sm:$0xff] }
  0x4e   : > { %3063 = vmatmul.mubr.msk.f32.gmra.mrb[8].mxu0 %vm332_vm1, %v3793_v0  ;;  %2996 = vmatprep.subr.msk.mxu1 %vm454_vm0, %v2639_v4 }
  0x4f   : > { %3065 = vmatprep.mubr.msk.f32.mxu0 %vm332_vm1, %v3797_v3 }
  0x50   : > { %2950 = vmatmul.mubr.msk.f32.gmra.mrb[2].mxu1 %vm332_vm1, %v3807_v5 }
  0x51   : > { %2952 = vmatprep.mubr.msk.f32.mxu1 %vm332_vm1, %v3815_v7 }
  0x52   : > { %3066 = vmatmul.mubr.msk.f32.gmra.mrb[10].mxu0 %vm332_vm1, %v3813_v6 }
  0x53   : > { %3068 = vmatprep.mubr.msk.f32.mxu0 %vm332_vm1, %v3817_v8 }
  0x54   : > { %2953 = vmatmul.mubr.msk.f32.gmra.mrb[4].mxu1 %vm332_vm1, %v3826_v9 }
  0x55   : > { %2955 = vmatprep.mubr.msk.f32.mxu1 %vm332_vm1, %v3832_v11 }
  0x56   : > { %3069 = vmatmul.mubr.msk.f32.gmra.mrb[12].mxu0 %vm332_vm1, %v3830_v10 }
  0x57   : > { %3071 = vmatprep.mubr.msk.f32.mxu0 %vm332_vm1, %v3834_v12 }
  0x58   : > { %2956 = vmatmul.mubr.msk.f32.gmra.mrb[6].mxu1 %vm332_vm1, %v3842_v13 }
  0x59   : > { %2958 = vmatprep.mubr.msk.f32.mxu1 %vm332_vm1, %v3848_v15 }
  0x5a   : > { %3072 = vmatmul.mubr.msk.f32.gmra.mrb[14].mxu0 %vm332_vm1, %v3846_v14 }
  0x5b   : > { %3076 = vmatprep.mubr.msk.f32.mxu0 %vm332_vm1, %v3815_v7 }
  0x5c   : > { %2959 = vmatmul.mubr.msk.f32.gmra.mrb[8].mxu1 %vm332_vm1, %v3856_v16 }
  0x5d   : > { %2961 = vmatprep.mubr.msk.f32.mxu1 %vm332_vm1, %v3860_v17 }
  0x5e   : > { %3077 = vmatmul.mubr.msk.f32.vlgmr.msra.gmra.mrb[0].mxu0 %vm332_vm1, %v3826_v9 }
  0x5f   : > { %3101 = vmatpush3.msk.msra.mxu0 %vm454_vm0, %v3734_v50  ;;  %3079 = vmatprep.mubr.msk.f32.mxu0 %vm332_vm1, %v3832_v11 }
  0x60   : > { %3126 = vmatprep.subr.msk.mxu0 %vm454_vm0, %v2729_v18  ;;  %2962 = vmatmul.mubr.msk.f32.gmra.mrb[10].mxu1 %vm332_vm1, %v3871_v19 }
  0x61   : > { %2964 = vmatprep.mubr.msk.f32.mxu1 %vm332_vm1, %v3877_v20 }
  0x62   : > { %3080 = vmatmul.mubr.msk.f32.gmra.mrb[2].mxu0 %vm332_vm1, %v3842_v13 }
  0x63   : > { %3082 = vmatprep.mubr.msk.f32.mxu0 %vm332_vm1, %v3848_v15 }
  0x64   : > { %2965 = vmatmul.mubr.msk.f32.gmra.mrb[12].mxu1 %vm332_vm1, %v3886_v21 }
  0x65   : > { %2967 = vmatprep.mubr.msk.f32.mxu1 %vm332_vm1, %v3890_v22 }
  0x66   : > { %3083 = vmatmul.mubr.msk.f32.gmra.mrb[4].mxu0 %vm332_vm1, %v3856_v16 }
  0x67   : > { %3085 = vmatprep.mubr.msk.f32.mxu0 %vm332_vm1, %v3860_v17 }
  0x68   : > { %2968 = vmatmul.mubr.msk.f32.gmra.mrb[14].mxu1 %vm332_vm1, %v3898_v23 }
  0x69   : > { %2972 = vmatprep.mubr.msk.f32.mxu1 %vm332_vm1, %v799_v24 }
  0x6a   : > { %3086 = vmatmul.mubr.msk.f32.gmra.mrb[6].mxu0 %vm332_vm1, %v3871_v19 }
  0x6b   : > { %3088 = vmatprep.mubr.msk.f32.mxu0 %vm332_vm1, %v3877_v20 }
  0x6c   : > { %2973 = vmatmul.mubr.msk.f32.vlgmr.msra.gmra.mrb[0].mxu1 %vm332_vm1, %v800_v25 }
  0x6d   : > { %2997 = vmatpush3.msk.msra.mxu1 %vm454_vm0, %v2639_v4  ;;  %2975 = vmatprep.mubr.msk.f32.mxu1 %vm332_vm1, %v3710_v42 }
  0x6e   : > { %3089 = vmatmul.mubr.msk.f32.gmra.mrb[8].mxu0 %vm332_vm1, %v3886_v21  ;;  %3152 = vmatprep.subr.msk.mxu1 %vm454_vm0, %v3559_v1 }
  0x6f   : > { %3091 = vmatprep.mubr.msk.f32.mxu0 %vm332_vm1, %v3890_v22 }
  0x70   : > { %2976 = vmatmul.mubr.msk.f32.gmra.mrb[2].mxu1 %vm332_vm1, %v3723_v44  ;;  %v4066_v44 = vld [vmem:[%s4169_s3] ss:$0 sm:$0xff] }
  0x71   : > { %2978 = vmatprep.mubr.msk.f32.mxu1 %vm332_vm1, %v3727_v46 }
  0x72   : > { %3092 = vmatmul.mubr.msk.f32.gmra.mrb[10].mxu0 %vm332_vm1, %v3898_v23 }
  0x73   : > { %3094 = vmatprep.mubr.msk.f32.mxu0 %vm332_vm1, %v3917_v26 }
  0x74   : > { %2979 = vmatmul.mubr.msk.f32.gmra.mrb[4].mxu1 %vm332_vm1, %v3748_v52 }
  0x75   : > { %2981 = vmatprep.mubr.msk.f32.mxu1 %vm332_vm1, %v3752_v54 }
  0x76   : > { %3095 = vmatmul.mubr.msk.f32.gmra.mrb[12].mxu0 %vm332_vm1, %v1734_v27 }
  0x77   : > { %3097 = vmatprep.mubr.msk.f32.mxu0 %vm332_vm1, %v1735_v28 }
  0x78   : > { %2982 = vmatmul.mubr.msk.f32.gmra.mrb[6].mxu1 %vm332_vm1, %v3766_v56 }
  0x79   : > { %2984 = vmatprep.mubr.msk.f32.mxu1 %vm332_vm1, %v3770_v58 }
  0x7a   : > { %3098 = vmatmul.mubr.msk.f32.gmra.mrb[14].mxu0 %vm332_vm1, %v1736_v29 }
  0x7b   : > { %3102 = vmatprep.mubr.msk.f32.mxu0 %vm332_vm1, %v3659_v32  ;;  %v1966_v32 = vld [vmem:[#allocation2 + $0xe1] sm:$0xff] }
  0x7c   : > { %2985 = vmatmul.mubr.msk.f32.gmra.mrb[8].mxu1 %vm332_vm1, %v3782_v60 }
  0x7d   : > { %2987 = vmatprep.mubr.msk.f32.mxu1 %vm332_vm1, %v3784_v62 }
  0x7e   : > { %3103 = vmatmul.mubr.msk.f32.vlgmr.msra.gmra.mrb[0].mxu0 %vm332_vm1, %v3677_v35 }
  0x7f   : > { %3127 = vmatpush3.msk.msra.mxu0 %vm454_vm0, %v2729_v18  ;;  %3105 = vmatprep.mubr.msk.f32.mxu0 %vm332_vm1, %v3681_v36 }
  0x80   : > { %2988 = vmatmul.mubr.msk.f32.gmra.mrb[10].mxu1 %vm332_vm1, %v3793_v0 }
  0x81   : > { %2990 = vmatprep.mubr.msk.f32.mxu1 %vm332_vm1, %v3797_v3 }
  0x82   : > { %3106 = vmatmul.mubr.msk.f32.gmra.mrb[2].mxu0 %vm332_vm1, %v3693_v37 }
  0x83   : > { %3108 = vmatprep.mubr.msk.f32.mxu0 %vm332_vm1, %v3695_v38 }
  0x84   : > { %2991 = vmatmul.mubr.msk.f32.gmra.mrb[12].mxu1 %vm332_vm1, %v3813_v6 }
  0x85   : > { %2993 = vmatprep.mubr.msk.f32.mxu1 %vm332_vm1, %v3817_v8 }
  0x86   : > { %3109 = vmatmul.mubr.msk.f32.gmra.mrb[4].mxu0 %vm332_vm1, %v3708_v39 }
  0x87   : > { %3111 = vmatprep.mubr.msk.f32.mxu0 %vm332_vm1, %v3725_v45 }
  0x88   : > { %2994 = vmatmul.mubr.msk.f32.gmra.mrb[14].mxu1 %vm332_vm1, %v3830_v10 }
  0x89   : > { %2998 = vmatprep.mubr.msk.f32.mxu1 %vm332_vm1, %v3795_v2 }
  0x8a   : > { %3112 = vmatmul.mubr.msk.f32.gmra.mrb[6].mxu0 %vm332_vm1, %v3743_v51 }
  0x8b   : > { %3114 = vmatprep.mubr.msk.f32.mxu0 %vm332_vm1, %v3750_v53 }
  0x8c   : > { %2999 = vmatmul.mubr.msk.f32.vlgmr.msra.gmra.mrb[0].mxu1 %vm332_vm1, %v3807_v5 }
  0x8d   : > { %3153 = vmatpush3.msk.msra.mxu1 %vm454_vm0, %v3559_v1  ;;  %3001 = vmatprep.mubr.msk.f32.mxu1 %vm332_vm1, %v3815_v7  ;;  %v1964_v1 = vld [vmem:[#allocation2 + $0xc9] sm:$0xff] }
  0x8e   : > { %3115 = vmatmul.mubr.msk.f32.gmra.mrb[8].mxu0 %vm332_vm1, %v3762_v55 }
  0x8f   : > { %3117 = vmatprep.mubr.msk.f32.mxu0 %vm332_vm1, %v3768_v57 }
  0x90   : > { %3002 = vmatmul.mubr.msk.f32.gmra.mrb[2].mxu1 %vm332_vm1, %v3826_v9 }
  0x91   : > { %3004 = vmatprep.mubr.msk.f32.mxu1 %vm332_vm1, %v3832_v11 }
  0x92   : > { %3118 = vmatmul.mubr.msk.f32.gmra.mrb[10].mxu0 %vm332_vm1, %v3778_v59 }
  0x93   : > { %3120 = vmatprep.mubr.msk.f32.mxu0 %vm332_vm1, %v1963_v30 }
  0x94   : > { %3005 = vmatmul.mubr.msk.f32.gmra.mrb[4].mxu1 %vm332_vm1, %v3842_v13 }
  0x95   : > { %3007 = vmatprep.mubr.msk.f32.mxu1 %vm332_vm1, %v3848_v15 }
  0x96   : > { %3121 = vmatmul.mubr.msk.f32.gmra.mrb[12].mxu0 %vm332_vm1, %v1964_v1 }
  0x97   : > { %3123 = vmatprep.mubr.msk.f32.mxu0 %vm332_vm1, %v1965_v31 }
  0x98   : > { %3008 = vmatmul.mubr.msk.f32.gmra.mrb[6].mxu1 %vm332_vm1, %v3856_v16 }
  0x99   : > { %3010 = vmatprep.mubr.msk.f32.mxu1 %vm332_vm1, %v3860_v17 }
  0x9a   : > { %3124 = vmatmul.mubr.msk.f32.gmra.mrb[14].mxu0 %vm332_vm1, %v1966_v32 }
  0x9b   : > { %3128 = vmatprep.mubr.msk.f32.mxu0 %vm332_vm1, %v3727_v46 }
  0x9c   : > { %3011 = vmatmul.mubr.msk.f32.gmra.mrb[8].mxu1 %vm332_vm1, %v3871_v19 }
  0x9d   : > { %3013 = vmatprep.mubr.msk.f32.mxu1 %vm332_vm1, %v3877_v20 }
  0x9e   : > { %3129 = vmatmul.mubr.msk.f32.vlgmr.msra.gmra.mrb[0].mxu0 %vm332_vm1, %v3748_v52 }
  0x9f   : > { %3131 = vmatprep.mubr.msk.f32.mxu0 %vm332_vm1, %v3752_v54 }
  0xa0   : > { %3014 = vmatmul.mubr.msk.f32.gmra.mrb[10].mxu1 %vm332_vm1, %v3886_v21 }
  0xa1   : > { %3016 = vmatprep.mubr.msk.f32.mxu1 %vm332_vm1, %v3890_v22 }
  0xa2   : > { %3132 = vmatmul.mubr.msk.f32.gmra.mrb[2].mxu0 %vm332_vm1, %v3766_v56 }
  0xa3   : > { %3134 = vmatprep.mubr.msk.f32.mxu0 %vm332_vm1, %v3770_v58 }
  0xa4   : > { %3017 = vmatmul.mubr.msk.f32.gmra.mrb[12].mxu1 %vm332_vm1, %v3898_v23 }
  0xa5   : > { %3019 = vmatprep.mubr.msk.f32.mxu1 %vm332_vm1, %v3917_v26 }
  0xa6   : > { %3135 = vmatmul.mubr.msk.f32.gmra.mrb[4].mxu0 %vm332_vm1, %v3782_v60 }
  0xa7   : > { %3137 = vmatprep.mubr.msk.f32.mxu0 %vm332_vm1, %v3784_v62 }
  0xa8   : > { %3020 = vmatmul.mubr.msk.f32.gmra.mrb[14].mxu1 %vm332_vm1, %v1734_v27 }
  0xa9   : > { %3036 = vmatprep.mubr.msk.f32.mxu1 %vm332_vm1, %v3725_v45 }
  0xaa   : > { %3138 = vmatmul.mubr.msk.f32.gmra.mrb[6].mxu0 %vm332_vm1, %v3793_v0 }
  0xab   : > { %3140 = vmatprep.mubr.msk.f32.mxu0 %vm332_vm1, %v3797_v3 }
  0xac   : > { %3037 = vmatmul.mubr.msk.f32.vlgmr.msra.gmra.mrb[8].mxu1 %vm332_vm1, %v3743_v51 }
  0xad   : > { %3039 = vmatprep.mubr.msk.f32.mxu1 %vm332_vm1, %v3750_v53 }
  0xae   : > { %3141 = vmatmul.mubr.msk.f32.gmra.mrb[8].mxu0 %vm332_vm1, %v3813_v6 }
  0xaf   : > { %3143 = vmatprep.mubr.msk.f32.mxu0 %vm332_vm1, %v3817_v8 }
  0xb0   : > { %3040 = vmatmul.mubr.msk.f32.gmra.mrb[10].mxu1 %vm332_vm1, %v3762_v55 }
  0xb1   : > { %3042 = vmatprep.mubr.msk.f32.mxu1 %vm332_vm1, %v3768_v57 }
  0xb2   : > { %3144 = vmatmul.mubr.msk.f32.gmra.mrb[10].mxu0 %vm332_vm1, %v3830_v10 }
  0xb3   : > { %3146 = vmatprep.mubr.msk.f32.mxu0 %vm332_vm1, %v3834_v12 }
  0xb4   : > { %3043 = vmatmul.mubr.msk.f32.gmra.mrb[12].mxu1 %vm332_vm1, %v3778_v59 }
  0xb5   : > { %3045 = vmatprep.mubr.msk.f32.mxu1 %vm332_vm1, %v1963_v30 }
  0xb6   : > { %3147 = vmatmul.mubr.msk.f32.gmra.mrb[12].mxu0 %vm332_vm1, %v3846_v14 }
  0xb7   : > { %3149 = vmatprep.mubr.msk.f32.mxu0 %vm332_vm1, %v2195_v33 }
  0xb8   : > { %3046 = vmatmul.mubr.msk.f32.gmra.mrb[14].mxu1 %vm332_vm1, %v1964_v1 }
  0xba   : > { %3150 = vmatmul.mubr.msk.f32.gmra.mrb[14].mxu0 %vm332_vm1, %v2196_v34 }
 0x15f   : > { %v3000_v35 = vpop.f32.mrb[0].mxu1 }
 0x160   : > { %v1165_v36 = vpop.f32.mrb[1].mxu1 }
 0x163   : > { %v3003_v37 = vpop.f32.mrb[2].mxu1 }
 0x164   : > { %v1175_v38 = vpop.f32.mrb[3].mxu1 }
 0x167   : > { %v3006_v39 = vpop.f32.mrb[4].mxu1 }
 0x168   : > { %v1185_v40 = vpop.f32.mrb[5].mxu1 }
 0x16b   : > { %v3009_v41 = vpop.f32.mrb[6].mxu1 }
 0x16c   : > { %v1195_v42 = vpop.f32.mrb[7].mxu1 }
 0x171   : > { %v3130_v43 = vpop.f32.mrb[0].mxu0 }
 0x172   : > { %v3154_v45 = vadd.f32 %v3130_v43, %v3000_v35  ;;  %v2316_v46 = vpop.f32.mrb[1].mxu0 }
 0x173   : > { %v3155_v47 = vadd.f32 %v2316_v46, %v1165_v36 }
 0x174   : > { %v2419_v48 = vmul.f32 %v3154_v45, %v4066_v44 }
 0x175   : > { %v2418_v49 = vmul.f32 %v3155_v47, %v4066_v44  ;;  %v3133_v50 = vpop.f32.mrb[2].mxu0 }
 0x176   : > { %2435 = vst [vmem:[%s4070_s5 + $0x8] sm:$0xff] %v2419_v48  ;;  %v3156_v51 = vadd.f32 %v3133_v50, %v3003_v37  ;;  %v2326_v52 = vpop.f32.mrb[3].mxu0 }
 0x177   : > { %2434 = vst [vmem:[%s4070_s5] sm:$0xff] %v2418_v49  ;;  %v3157_v53 = vadd.f32 %v2326_v52, %v1175_v38 }
 0x178   : > { %v2421_v54 = vmul.f32 %v3156_v51, %v4066_v44 }
 0x179   : > { %v2420_v55 = vmul.f32 %v3157_v53, %v4066_v44  ;;  %v3136_v56 = vpop.f32.mrb[4].mxu0 }
 0x17a   : > { %2437 = vst [vmem:[%s4070_s5 + $0x18] sm:$0xff] %v2421_v54  ;;  %v3158_v57 = vadd.f32 %v3136_v56, %v3006_v39  ;;  %v2336_v58 = vpop.f32.mrb[5].mxu0 }
 0x17b   : > { %2436 = vst [vmem:[%s4070_s5 + $0x10] sm:$0xff] %v2420_v55  ;;  %v3159_v59 = vadd.f32 %v2336_v58, %v1185_v40 }
 0x17c   : > { %v2423_v60 = vmul.f32 %v3158_v57, %v4066_v44 }
 0x17d   : > { %v2422_v61 = vmul.f32 %v3159_v59, %v4066_v44  ;;  %v3139_v62 = vpop.f32.mrb[6].mxu0 }
 0x17e   : > { %2439 = vst [vmem:[%s4070_s5 + $0x28] sm:$0xff] %v2423_v60  ;;  %v3160_v63 = vadd.f32 %v3139_v62, %v3009_v41  ;;  %v2346_v0 = vpop.f32.mrb[7].mxu0 }
 0x17f   : > { %2438 = vst [vmem:[%s4070_s5 + $0x20] sm:$0xff] %v2422_v61  ;;  %v3161_v2 = vadd.f32 %v2346_v0, %v1195_v42  ;;  %v3038_v4 = vpop.f32.mrb[8].mxu1 }
 0x180   : > { %v2425_v3 = vmul.f32 %v3160_v63, %v4066_v44  ;;  %v1435_v7 = vpop.f32.mrb[9].mxu1 }
 0x181   : > { %v2424_v5 = vmul.f32 %v3161_v2, %v4066_v44  ;;  %v3142_v6 = vpop.f32.mrb[8].mxu0 }
 0x182   : > { %2441 = vst [vmem:[%s4070_s5 + $0x38] sm:$0xff] %v2425_v3  ;;  %v3162_v8 = vadd.f32 %v3142_v6, %v3038_v4  ;;  %v2356_v9 = vpop.f32.mrb[9].mxu0 }
 0x183   : > { %2440 = vst [vmem:[%s4070_s5 + $0x30] sm:$0xff] %v2424_v5  ;;  %v3163_v10 = vadd.f32 %v2356_v9, %v1435_v7  ;;  %v3041_v12 = vpop.f32.mrb[10].mxu1 }
 0x184   : > { %v2427_v11 = vmul.f32 %v3162_v8, %v4066_v44  ;;  %v1445_v15 = vpop.f32.mrb[11].mxu1 }
 0x185   : > { %v2426_v13 = vmul.f32 %v3163_v10, %v4066_v44  ;;  %v3145_v14 = vpop.f32.mrb[10].mxu0 }
 0x186   : > { %2443 = vst [vmem:[%s4070_s5 + $0x48] sm:$0xff] %v2427_v11  ;;  %v3164_v16 = vadd.f32 %v3145_v14, %v3041_v12  ;;  %v2366_v17 = vpop.f32.mrb[11].mxu0 }
 0x187   : > { %2442 = vst [vmem:[%s4070_s5 + $0x40] sm:$0xff] %v2426_v13  ;;  %v3165_v18 = vadd.f32 %v2366_v17, %v1445_v15  ;;  %v3044_v20 = vpop.f32.mrb[12].mxu1 }
 0x188   : > { %v2429_v19 = vmul.f32 %v3164_v16, %v4066_v44  ;;  %v1455_v23 = vpop.f32.mrb[13].mxu1 }
 0x189   : > { %v2428_v21 = vmul.f32 %v3165_v18, %v4066_v44  ;;  %v3148_v22 = vpop.f32.mrb[12].mxu0 }
 0x18a   : > { %2445 = vst [vmem:[%s4070_s5 + $0x58] sm:$0xff] %v2429_v19  ;;  %v3166_v24 = vadd.f32 %v3148_v22, %v3044_v20  ;;  %v2376_v25 = vpop.f32.mrb[13].mxu0 }
 0x18b   : > { %2444 = vst [vmem:[%s4070_s5 + $0x50] sm:$0xff] %v2428_v21  ;;  %v3167_v26 = vadd.f32 %v2376_v25, %v1455_v23  ;;  %v3047_v28 = vpop.f32.mrb[14].mxu1 }
 0x18c   : > { %v2431_v27 = vmul.f32 %v3166_v24, %v4066_v44  ;;  %v1465_v1 = vpop.f32.mrb[15].mxu1 }
 0x18d   : > { %v2430_v29 = vmul.f32 %v3167_v26, %v4066_v44  ;;  %v3151_v30 = vpop.f32.mrb[14].mxu0 }
 0x18e   : > { %2447 = vst [vmem:[%s4070_s5 + $0x68] sm:$0xff] %v2431_v27  ;;  %v3168_v31 = vadd.f32 %v3151_v30, %v3047_v28  ;;  %v2386_v32 = vpop.f32.mrb[15].mxu0 }
 0x18f   : > { %2446 = vst [vmem:[%s4070_s5 + $0x60] sm:$0xff] %v2430_v29  ;;  %v3169_v33 = vadd.f32 %v2386_v32, %v1465_v1 }
 0x190   : > { %v2433_v34 = vmul.f32 %v3168_v31, %v4066_v44 }
 0x191   : > { %v2432_v35 = vmul.f32 %v3169_v33, %v4066_v44 }
 0x192   : > { %2449 = vst [vmem:[%s4070_s5 + $0x78] sm:$0xff] %v2433_v34 }
 0x193   : > { %2448 = vst [vmem:[%s4070_s5 + $0x70] sm:$0xff] %v2432_v35 }
 0x194   : > { %3371 = shalt.err (!%p3368_p9)
}
 0x195   : > { %s3372_s6 = scalar_lea.hbm %s4105_s23, 2048  ;;  %s3376_s11 = scalar_lea.hbm %s4170_s4, 8192 }
 0x196   : > { %p3373_p10 = scmp.ne.s32.totalorder %s4105_s23, %s3372_s6  ;;  %p3377_p13 = scmp.lt.u32.totalorder %s4105_s23, %s4170_s4 }
 0x197   : > { %p3378_p0 = scmp.lt.u32.totalorder %s3376_s11, %s3372_s6  ;;  %p3380_p2 = scmp.lt.u32.totalorder %s3372_s6, %s4105_s23 }
 0x198   : > { %p3374_p11 = pnand %p3373_p10, %p3533_p3 }
 0x199   : > { %p3379_p1 = por %p3378_p0, %p3377_p13 }
 0x19a   : > { %p3375_p12 = pneg %p3374_p11 }
 0x19b   : > { %p3381_p4 = por %p3380_p2, %p3379_p1 }
 0x19d   : > { %p3382_p5 = pnand %p3381_p4, %p3375_p12 }
 0x19f   : > { %3385 = shalt.err (!%p3382_p5)
}
 0x1a0   : > { %s3455_s14 = smov 128   ;;  %s3456_s12 = smov 8  }
 0x1a1   : > { %3285 = dma.vmem_to_hbm [thread:$0]  (%p3533_p3), %s4107_s19, 2048, %s4105_s23, %s4114_s24, %s3455_s14, %s3455_s14, %s3456_s12  }
 0x1a2 PF: > { %p3291_p6 = scmp.ge.s32.totalorder %s3452_s22, 2  ;;  %s2482_s30 = sand.u32 1, %s3424_s15  }
 0x1a3   : > { %s2483_s8 = scalar_lea.sflag [#allocation4], %s2482_s30 }
 0x1a4   : > { %p3288_p7 = pnand %p3291_p6, %p3542_p8 }
 0x1a6   : > { %3419 = dma.done.wait (!%p3288_p7), %s2483_s8, 2048  }
 0x1a7   : > { %3421 = vsyncadd (!%p3288_p7), %s2483_s8, 4294965248  ;;  %s17_s22 = sadd.s32 1, %s3452_s22   ;;  %s4174_s15 = smov %s3428_s16 }
 0x1a8   : > { %p14_p9 = scmp.ge.s32.totalorder %s17_s22, 6   ;;  %s4175_s16 = smov %s3432_s17 }
 0x1a9   : > { %s4176_s17 = smov %s3551_s7  ;;  %s4177_s18 = smov %s3444_s20 }
 0x1aa   : > { %s4178_s19 = smov %s3448_s21  ;;  %s4179_s20 = smov %s4182_s25 }
 0x1ab   : > { %s4180_s21 = smov %s4186_s26  ;;  %16 = sbr.rel (!%p14_p9) target bundleno = 5 (0x5), region = 85 }
 0x1b2   :  { %2488 = vsyncpa [#allocation4], 1 }
 0x1b3   :  { %2490 = vsyncpa [#allocation4 + $0x1], 1 }

</bundles_post_ra>
